<compile_context>
chip_gen: v6e
topology: v6e:2x2x1
jax: 0.10.0
libtpu: 0.0.40
codegen_flags: <defaults>
</compile_context>

<pallas_src>
import jax
import jax.numpy as jnp
from jax.experimental import pallas as pl
from jax.experimental.pallas import tpu as pltpu


def _ff_kernel(x_ref, w1_ref, b1_ref, w2_ref, b2_ref, o_ref, acc_ref):
    # x_ref:  (tm, E)    w1_ref: (E, th)   b1_ref: (1, th)
    # w2_ref: (th, E)    b2_ref: (1, E)    o_ref:  (tm, E)
    # acc_ref: VMEM (tm, E) f32 accumulator, resident across the H axis.
    k = pl.program_id(1)

    @pl.when(k == 0)
    def _init():
        # Seed the accumulator with b2 so the second bias is added exactly once.
        acc_ref[...] = jnp.broadcast_to(
            b2_ref[...].astype(jnp.float32), acc_ref.shape)

    h = jnp.dot(x_ref[...], w1_ref[...], preferred_element_type=jnp.float32)
    h = jnp.maximum(h + b1_ref[...].astype(jnp.float32), 0.0)   # bias + ReLU (f32)
    acc_ref[...] += jnp.dot(h.astype(w2_ref.dtype), w2_ref[...],
                            preferred_element_type=jnp.float32)

    @pl.when(k == pl.num_programs(1) - 1)
    def _finalize():
        o_ref[...] = acc_ref[...].astype(o_ref.dtype)


def _round_up(a, b):
    return (a + b - 1) // b * b


def feed_forward(x, w1, b1, w2, b2, *, tm=256, th=512, compute_dtype=None):
    """x: (..., E); w1: (E, H); b1: (H,); w2: (H, E); b2: (E,).

    tm / th are upper bounds; they are shrunk to fit the actual problem size.
    compute_dtype (e.g. jnp.bfloat16) casts MXU operands; accumulation stays f32.
    """
    orig_shape = x.shape
    E = orig_shape[-1]
    H = w1.shape[1]
    out_dtype = x.dtype

    if compute_dtype is not None:
        x = x.astype(compute_dtype)
        w1 = w1.astype(compute_dtype)
        w2 = w2.astype(compute_dtype)

    x2 = x.reshape(-1, E)
    M = x2.shape[0]

    # --- M tile: as large as possible (<= tm), aligned to the sublane packing
    # of the activation dtype; pad M instead of asserting divisibility.
    sub = 16 if x2.dtype == jnp.bfloat16 else 8
    tm_eff = max(sub, min(_round_up(tm, sub), _round_up(M, sub)))
    M_pad = _round_up(M, tm_eff)
    if M_pad != M:
        x2 = jnp.pad(x2, ((0, M_pad - M), (0, 0)))

    # --- H tile: multiple of 128 that divides H, else fall back to whole H.
    th_eff = min(th, H)
    if H % th_eff != 0 or th_eff % 128 != 0:
        th_eff = H

    grid = (M_pad // tm_eff, H // th_eff)

    b1_2d = b1.reshape(1, H)
    b2_2d = b2.reshape(1, E)

    # --- VMEM budget (double-buffered inputs/outputs + f32 accumulator).
    x_b = jnp.dtype(x2.dtype).itemsize
    w_b = jnp.dtype(w1.dtype).itemsize
    o_b = jnp.dtype(out_dtype).itemsize
    bias_b = jnp.dtype(b1.dtype).itemsize
    vmem_need = (2 * tm_eff * E * x_b
                 + 2 * (E * th_eff + th_eff * E) * w_b
                 + 2 * (th_eff + E) * bias_b
                 + 2 * tm_eff * E * o_b
                 + tm_eff * E * 4)
    # Keep under the 64 MiB-per-TC floor (v7x); raise above the 32 MiB default
    # scoped limit when needed.
    vmem_limit = int(min(64 * 1024 * 1024,
                         max(vmem_need * 5 // 4, 32 * 1024 * 1024)))

    cost = pl.CostEstimate(
        flops=4 * M_pad * E * H,          # two matmuls, 2*M*E*H flops each
        transcendentals=0,
        bytes_accessed=int(x2.size * x_b + w1.size * w_b + w2.size * w_b
                           + (b1.size + b2.size) * bias_b + M_pad * E * o_b),
    )

    out = pl.pallas_call(
        _ff_kernel,
        out_shape=jax.ShapeDtypeStruct((M_pad, E), out_dtype),
        grid=grid,
        in_specs=[
            pl.BlockSpec((tm_eff, E), lambda i, k: (i, 0)),    # x row tile
            pl.BlockSpec((E, th_eff), lambda i, k: (0, k)),    # W1 H-slice
            pl.BlockSpec((1, th_eff), lambda i, k: (0, k)),    # b1 H-slice
            pl.BlockSpec((th_eff, E), lambda i, k: (k, 0)),    # W2 H-slice
            pl.BlockSpec((1, E), lambda i, k: (0, 0)),         # b2
        ],
        out_specs=pl.BlockSpec((tm_eff, E), lambda i, k: (i, 0)),
        scratch_shapes=[pltpu.VMEM((tm_eff, E), jnp.float32)],
        compiler_params=pltpu.CompilerParams(
            dimension_semantics=("parallel", "arbitrary"),
            vmem_limit_bytes=vmem_limit),
        cost_estimate=cost,
    )(x2, w1, b1_2d, w2, b2_2d)

    if M_pad != M:
        out = out[:M]
    return out.reshape(orig_shape)


def init_params(key, embedding_dim, ff_hidden_dim, dtype=jnp.float32):
    """Deterministic synthetic init (matches nn.Linear shapes, transposed)."""
    k1, k2, k3, k4 = jax.random.split(key, 4)
    # nn.Linear(embedding_dim, ff_hidden_dim).weight is (H, E); we store (E, H).
    w1 = jax.random.normal(k1, (embedding_dim, ff_hidden_dim), dtype) * 0.02
    b1 = jax.random.normal(k2, (ff_hidden_dim,), dtype) * 0.02
    w2 = jax.random.normal(k3, (ff_hidden_dim, embedding_dim), dtype) * 0.02
    b2 = jax.random.normal(k4, (embedding_dim,), dtype) * 0.02
    return w1, b1, w2, b2


if __name__ == "__main__":
    batch, seq = 2, 8
    embedding_dim, ff_hidden_dim = 128, 256

    key = jax.random.PRNGKey(0)
    kx, kp = jax.random.split(key)
    x = jax.random.normal(kx, (batch, seq, embedding_dim), jnp.float32)
    w1, b1, w2, b2 = init_params(kp, embedding_dim, ff_hidden_dim)

    # Pure-JAX reference.
    ref = jnp.maximum(x @ w1 + b1, 0.0) @ w2 + b2

    # f32 end-to-end path.
    out = feed_forward(x, w1, b1, w2, b2)
    out = jax.block_until_ready(out)
    assert out.shape == x.shape
    assert jnp.allclose(out, ref, atol=1e-4, rtol=1e-4)

    # bf16 MXU operands with f32 accumulation (v6e/v7x fast path).
    out_bf16 = feed_forward(x, w1, b1, w2, b2, compute_dtype=jnp.bfloat16)
    out_bf16 = jax.block_until_ready(out_bf16)
    assert out_bf16.shape == x.shape and out_bf16.dtype == x.dtype
    assert jnp.allclose(out_bf16, ref, atol=5e-2, rtol=5e-2)

    print("KERNEL_OK")
</pallas_src>

<mosaic_0001>
module attributes {stable_mosaic.version = 11 : i64} {
  func.func @_ff_kernel(%arg0: i32, %arg1: i32, %arg2: memref<16x128xf32, #tpu.memory_space<vmem>>, %arg3: memref<128x256xf32, #tpu.memory_space<vmem>>, %arg4: memref<1x256xf32, #tpu.memory_space<vmem>>, %arg5: memref<256x128xf32, #tpu.memory_space<vmem>>, %arg6: memref<1x128xf32, #tpu.memory_space<vmem>>, %arg7: memref<16x128xf32, #tpu.memory_space<vmem>>, %arg8: memref<16x128xf32, #tpu.memory_space<vmem>>) attributes {dimension_semantics = [#tpu.dimension_semantics<parallel>, #tpu.dimension_semantics<arbitrary>], iteration_bounds = array<i64: 1, 1>, scalar_prefetch = 0 : i64, scratch_operands = 1 : i64, tpu.core_type = #tpu.core_type<tc>, window_params = [{transform_indices = @transform_0, window_bounds = array<i64: 16, 128>}, {transform_indices = @transform_1, window_bounds = array<i64: 128, 256>}, {transform_indices = @transform_2, window_bounds = array<i64: 1, 256>}, {transform_indices = @transform_3, window_bounds = array<i64: 256, 128>}, {pipeline_mode = #tpu.pipeline_mode<synchronous>, transform_indices = @transform_4, window_bounds = array<i64: 1, 128>}, {transform_indices = @transform_5, window_bounds = array<i64: 16, 128>}]} {
    %c0_i32 = arith.constant 0 : i32
    %0 = arith.cmpi eq, %arg1, %c0_i32 : i32
    %1 = arith.extui %0 : i1 to i32
    %c0_i32_0 = arith.constant 0 : i32
    %2 = arith.cmpi ne, %1, %c0_i32_0 : i32
    scf.if %2 {
      %c0_16 = arith.constant 0 : index
      %c0_17 = arith.constant 0 : index
      %19 = vector.load %arg6[%c0_16, %c0_17] : memref<1x128xf32, #tpu.memory_space<vmem>>, vector<1x128xf32>
      %20 = vector.shape_cast %19 : vector<1x128xf32> to vector<1x128xf32>
      %21 = vector.broadcast %20 : vector<1x128xf32> to vector<16x128xf32>
      %c0_18 = arith.constant 0 : index
      %c0_19 = arith.constant 0 : index
      %22 = vector.load %arg8[%c0_18, %c0_19] : memref<16x128xf32, #tpu.memory_space<vmem>>, vector<16x128xf32>
      tpu.vector_store %arg8[%c0_18, %c0_19], %21 {strides = array<i32>} : memref<16x128xf32, #tpu.memory_space<vmem>>, vector<16x128xf32>,
    } else {
    }
    %c0 = arith.constant 0 : index
    %c0_1 = arith.constant 0 : index
    %3 = vector.load %arg2[%c0, %c0_1] : memref<16x128xf32, #tpu.memory_space<vmem>>, vector<16x128xf32>
    %c0_2 = arith.constant 0 : index
    %c0_3 = arith.constant 0 : index
    %4 = vector.load %arg3[%c0_2, %c0_3] : memref<128x256xf32, #tpu.memory_space<vmem>>, vector<128x256xf32>
    %cst = arith.constant dense<0.000000e+00> : vector<16x256xf32>
    %5 = tpu.matmul %3, %4, %cst {dimension_numbers = #tpu.dot_dimension_numbers<[1], [0], [0], [1], [0, 0, 1, 1], [], []>} : vector<16x128xf32>, vector<128x256xf32>, vector<16x256xf32> -> vector<16x256xf32>
    %c0_4 = arith.constant 0 : index
    %c0_5 = arith.constant 0 : index
    %6 = vector.load %arg4[%c0_4, %c0_5] : memref<1x256xf32, #tpu.memory_space<vmem>>, vector<1x256xf32>
    %7 = vector.broadcast %6 : vector<1x256xf32> to vector<16x256xf32>
    %8 = arith.addf %5, %7 : vector<16x256xf32>
    %cst_6 = arith.constant 0.000000e+00 : f32
    %9 = vector.broadcast %cst_6 : f32 to vector<16x256xf32>
    %10 = arith.maximumf %8, %9 : vector<16x256xf32>
    %c0_7 = arith.constant 0 : index
    %c0_8 = arith.constant 0 : index
    %11 = vector.load %arg8[%c0_7, %c0_8] : memref<16x128xf32, #tpu.memory_space<vmem>>, vector<16x128xf32>
    %c0_9 = arith.constant 0 : index
    %c0_10 = arith.constant 0 : index
    %12 = vector.load %arg5[%c0_9, %c0_10] : memref<256x128xf32, #tpu.memory_space<vmem>>, vector<256x128xf32>
    %cst_11 = arith.constant dense<0.000000e+00> : vector<16x128xf32>
    %13 = tpu.matmul %10, %12, %cst_11 {dimension_numbers = #tpu.dot_dimension_numbers<[1], [0], [0], [1], [0, 0, 1, 1], [], []>} : vector<16x256xf32>, vector<256x128xf32>, vector<16x128xf32> -> vector<16x128xf32>
    %14 = arith.addf %11, %13 : vector<16x128xf32>
    %c0_12 = arith.constant 0 : index
    %c0_13 = arith.constant 0 : index
    %15 = vector.load %arg8[%c0_12, %c0_13] : memref<16x128xf32, #tpu.memory_space<vmem>>, vector<16x128xf32>
    tpu.vector_store %arg8[%c0_12, %c0_13], %14 {strides = array<i32>} : memref<16x128xf32, #tpu.memory_space<vmem>>, vector<16x128xf32>,
    %c0_i32_14 = arith.constant 0 : i32
    %16 = arith.cmpi eq, %arg1, %c0_i32_14 : i32
    %17 = arith.extui %16 : i1 to i32
    %c0_i32_15 = arith.constant 0 : i32
    %18 = arith.cmpi ne, %17, %c0_i32_15 : i32
    scf.if %18 {
      %c0_16 = arith.constant 0 : index
      %c0_17 = arith.constant 0 : index
      %19 = vector.load %arg8[%c0_16, %c0_17] : memref<16x128xf32, #tpu.memory_space<vmem>>, vector<16x128xf32>
      %c0_18 = arith.constant 0 : index
      %c0_19 = arith.constant 0 : index
      %20 = vector.load %arg7[%c0_18, %c0_19] : memref<16x128xf32, #tpu.memory_space<vmem>>, vector<16x128xf32>
      tpu.vector_store %arg7[%c0_18, %c0_19], %19 {strides = array<i32>} : memref<16x128xf32, #tpu.memory_space<vmem>>, vector<16x128xf32>,
    } else {
    }
    return
  }
  func.func @transform_0(%arg0: i32, %arg1: i32) -> (i32, i32) {
    %c0_i32 = arith.constant 0 : i32
    %c0_i32_0 = arith.constant 0 : i32
    return %arg0, %c0_i32 : i32, i32
  }
  func.func @transform_1(%arg0: i32, %arg1: i32) -> (i32, i32) {
    %c0_i32 = arith.constant 0 : i32
    %c0_i32_0 = arith.constant 0 : i32
    return %c0_i32, %arg1 : i32, i32
  }
  func.func @transform_2(%arg0: i32, %arg1: i32) -> (i32, i32) {
    %c0_i32 = arith.constant 0 : i32
    %c0_i32_0 = arith.constant 0 : i32
    return %c0_i32, %arg1 : i32, i32
  }
  func.func @transform_3(%arg0: i32, %arg1: i32) -> (i32, i32) {
    %c0_i32 = arith.constant 0 : i32
    %c0_i32_0 = arith.constant 0 : i32
    return %arg1, %c0_i32 : i32, i32
  }
  func.func @transform_4(%arg0: i32, %arg1: i32) -> (i32, i32) {
    %c0_i32 = arith.constant 0 : i32
    %c0_i32_0 = arith.constant 0 : i32
    %c0_i32_1 = arith.constant 0 : i32
    return %c0_i32, %c0_i32_0 : i32, i32
  }
  func.func @transform_5(%arg0: i32, %arg1: i32) -> (i32, i32) {
    %c0_i32 = arith.constant 0 : i32
    %c0_i32_0 = arith.constant 0 : i32
    return %arg0, %c0_i32 : i32, i32
  }
}

</mosaic_0001>

<bundles_post_ra>
// kernel: tpu_custom_call.1
= control target key start
LH: loop header
LB: loop body
LE: loop exit
PB: predicated region body
PF: predicated region fallthrough
CT: control target
= control target key end

     0   :  { %10 = vsyncpa [#allocation4], 0  ;;  %s542_s0 = inlined_call_operand.hbm [shape: f32[16,128], index: 0, kind: input, shape index: {}]   ;;  %s543_s1 = inlined_call_operand.hbm [shape: f32[128,256], index: 1, kind: input, shape index: {}]   ;;  %s544_s2 = inlined_call_operand.vmem [shape: f32[1,256], index: 2, kind: input, shape index: {}]   ;;  %s545_s3 = inlined_call_operand.hbm [shape: f32[256,128], index: 3, kind: input, shape index: {}]   ;;  %s546_s4 = inlined_call_operand.vmem [shape: f32[1,128], index: 4, kind: input, shape index: {}]   ;;  %s547_s5 = inlined_call_operand.hbm [shape: f32[16,128], index: 5, kind: output, shape index: {}]  }
   0x1   :  { %11 = vsyncpa [#allocation7], 0 }
   0x2   :  { %12 = vsyncpa [#allocation5], 0  ;;  %s474_s18 = smov [#allocation6]  }
   0x3   :  { %s30_s19 = sshll.u32 %s474_s18, 4  ;;  %s31_s19 = int_to_ptr.vmem [resolvable:$true] %s30_s19 }
   0x4   :  { %s396_s20 = scalar_lea.vmem %s31_s19, 4096  ;;  %p401_p1 = scmp.lt.s32.totalorder %s31_s19, %s31_s19 }
   0x5   :  { %p397_p0 = scmp.ne.s32.totalorder %s31_s19, %s396_s20  ;;  %p402_p2 = scmp.lt.s32.totalorder %s396_s20, %s396_s20 }
   0x7   :  { %p403_p3 = por %p402_p2, %p401_p1 }
   0x9   :  { %p404_p4 = pnand %p403_p3, %p397_p0 }
   0xb   :  { %407 = shalt.err (!%p404_p4)
}
   0xc   :  { %s475_s21 = smov 256   ;;  %s476_s22 = smov 16  }
   0xd   :  { %36 = dma.hbm_to_vmem [thread:$0]  %s543_s1, 4096, %s31_s19, [#allocation7], %s475_s21, %s475_s21, %s476_s22  }
   0xe   :  { %s477_s25 = smov [#allocation3]  }
   0xf   :  { %s18_s26 = sshll.u32 %s477_s25, 4  ;;  %s19_s26 = int_to_ptr.vmem [resolvable:$true] %s18_s26 }
  0x10   :  { %s416_s27 = scalar_lea.vmem %s19_s26, 256  ;;  %p421_p6 = scmp.lt.s32.totalorder %s19_s26, %s19_s26 }
  0x11   :  { %p417_p5 = scmp.ne.s32.totalorder %s19_s26, %s416_s27  ;;  %p422_p7 = scmp.lt.s32.totalorder %s416_s27, %s416_s27 }
  0x13   :  { %p423_p8 = por %p422_p7, %p421_p6 }
  0x15   :  { %p424_p9 = pnand %p423_p8, %p417_p5 }
  0x17   :  { %427 = shalt.err (!%p424_p9)
}
  0x18   :  { %s478_s28 = smov 128   ;;  %s479_s29 = smov 8  }
  0x19   :  { %24 = dma.hbm_to_vmem [thread:$0]  %s542_s0, 256, %s19_s26, [#allocation4], %s478_s28, %s478_s28, %s479_s29  }
  0x1a   :  { %s480_s1 = smov [#allocation8]  }
  0x1b   :  { %s44_s7 = sshll.u32 %s480_s1, 4  ;;  %s45_s7 = int_to_ptr.vmem [resolvable:$true] %s44_s7 }
  0x1c   :  { %s436_s8 = scalar_lea.vmem %s45_s7, 4096  ;;  %p441_p11 = scmp.lt.s32.totalorder %s45_s7, %s45_s7 }
  0x1d   :  { %p437_p10 = scmp.ne.s32.totalorder %s45_s7, %s436_s8  ;;  %p442_p12 = scmp.lt.s32.totalorder %s436_s8, %s436_s8 }
  0x1f   :  { %p443_p13 = por %p442_p12, %p441_p11 }
  0x21   :  { %p444_p0 = pnand %p443_p13, %p437_p10 }
  0x23   :  { %447 = shalt.err (!%p444_p0)
}
  0x24   :  { %50 = dma.hbm_to_vmem [thread:$0]  %s545_s3, 4096, %s45_s7, [#allocation7], %s478_s28, %s478_s28, %s479_s29  }
  0x25   :  { %468 = dma.done.wait [#allocation4], 256  }
  0x26   :  { %469 = vsyncadd [#allocation4], 4294967040 }
  0x27   :  { %470 = dma.done.wait [#allocation7], 8192  }
  0x28   :  { %471 = vsyncadd [#allocation7], 4294959104  ;;  %v481_v0 = vmov 0.0   ;;  %v108_v1 = vld [vmem:[#allocation6 + $0xf8] sm:$0xff]  ;;  %v107_v2 = vld [vmem:[#allocation6 + $0xf0] sm:$0xff]  ;;  %s482_s12 = smov [#allocation9]  }
  0x29   :  { %185 = vmatprep.mubr.f32.mxu0 %v481_v0  ;;  %v106_v3 = vld [vmem:[#allocation6 + $0xe8] sm:$0xff]  ;;  %121 = vmatprep.subr.mxu0 %v108_v1  ;;  %v105_v4 = vld [vmem:[#allocation6 + $0xe0] sm:$0xff]  ;;  %v104_v5 = vld [vmem:[#allocation6 + $0xd8] sm:$0xff]  ;;  %s327_s13 = sshll.u32 %s482_s12, 4  ;;  %s328_s13 = int_to_ptr.vmem [resolvable:$true] %s327_s13 }
  0x2a   :  { %122 = vmatpush1.msra.mxu0 %v107_v2  ;;  %v103_v6 = vld [vmem:[#allocation6 + $0xd0] sm:$0xff]  ;;  %v102_v7 = vld [vmem:[#allocation6 + $0xc8] sm:$0xff]  ;;  %v101_v8 = vld [vmem:[#allocation6 + $0xc0] sm:$0xff]  ;;  %s448_s14 = scalar_lea.vmem %s328_s13, 256  ;;  %p453_p2 = scmp.lt.s32.totalorder %s328_s13, %s328_s13 }
  0x2b   :  { %123 = vmatprep.subr.mxu0 %v106_v3  ;;  %v100_v9 = vld [vmem:[#allocation6 + $0xb8] sm:$0xff]  ;;  %v99_v10 = vld [vmem:[#allocation6 + $0xb0] sm:$0xff]  ;;  %v98_v11 = vld [vmem:[#allocation6 + $0xa8] sm:$0xff]  ;;  %p449_p1 = scmp.ne.s32.totalorder %s328_s13, %s448_s14  ;;  %p454_p3 = scmp.lt.s32.totalorder %s448_s14, %s448_s14 }
  0x2c   :  { %124 = vmatpush1.msra.mxu0 %v105_v4  ;;  %v97_v12 = vld [vmem:[#allocation6 + $0xa0] sm:$0xff]  ;;  %v96_v13 = vld [vmem:[#allocation6 + $0x98] sm:$0xff]  ;;  %v95_v14 = vld [vmem:[#allocation6 + $0x90] sm:$0xff] }
  0x2d   :  { %125 = vmatprep.subr.mxu0 %v104_v5  ;;  %v235_v15 = vld [vmem:[#allocation8 + $0xf8] sm:$0xff]  ;;  %v94_v17 = vld [vmem:[#allocation6 + $0x88] sm:$0xff]  ;;  %v234_v18 = vld [vmem:[#allocation8 + $0xf0] sm:$0xff]  ;;  %p455_p4 = por %p454_p3, %p453_p2 }
  0x2e   :  { %126 = vmatpush1.msra.mxu0 %v103_v6  ;;  %v219_v16 = vld [vmem:[#allocation8 + $0x78] sm:$0xff]  ;;  %341 = vmatprep.subr.mxu1 %v235_v15  ;;  %v218_v19 = vld [vmem:[#allocation8 + $0x70] sm:$0xff]  ;;  %v93_v20 = vld [vmem:[#allocation6 + $0x80] sm:$0xff] }
  0x2f   :  { %127 = vmatprep.subr.mxu0 %v102_v7  ;;  %342 = vmatpush3.msra.mxu1 %v219_v16  ;;  %v233_v21 = vld [vmem:[#allocation8 + $0xe8] sm:$0xff]  ;;  %v92_v22 = vld [vmem:[#allocation6 + $0x78] sm:$0xff]  ;;  %v91_v24 = vld [vmem:[#allocation6 + $0x70] sm:$0xff]  ;;  %p456_p5 = pnand %p455_p4, %p449_p1 }
  0x30   :  { %128 = vmatpush1.msra.mxu0 %v101_v8  ;;  %343 = vmatprep.subr.mxu1 %v234_v18  ;;  %v217_v23 = vld [vmem:[#allocation8 + $0x68] sm:$0xff]  ;;  %v232_v25 = vld [vmem:[#allocation8 + $0xe0] sm:$0xff]  ;;  %v231_v29 = vld [vmem:[#allocation8 + $0xd8] sm:$0xff] }
  0x31   :  { %129 = vmatprep.subr.mxu0 %v100_v9  ;;  %344 = vmatpush3.msra.mxu1 %v218_v19  ;;  %v90_v26 = vld [vmem:[#allocation6 + $0x68] sm:$0xff]  ;;  %v216_v27 = vld [vmem:[#allocation8 + $0x60] sm:$0xff]  ;;  %v88_v30 = vld [vmem:[#allocation6 + $0x58] sm:$0xff] }
  0x32   :  { %130 = vmatpush1.msra.mxu0 %v99_v10  ;;  %345 = vmatprep.subr.mxu1 %v233_v21  ;;  %v89_v28 = vld [vmem:[#allocation6 + $0x60] sm:$0xff]  ;;  %v215_v31 = vld [vmem:[#allocation8 + $0x58] sm:$0xff]  ;;  %v87_v32 = vld [vmem:[#allocation6 + $0x50] sm:$0xff] }
  0x33   :  { %131 = vmatprep.subr.mxu0 %v98_v11  ;;  %346 = vmatpush3.msra.mxu1 %v217_v23  ;;  %v230_v33 = vld [vmem:[#allocation8 + $0xd0] sm:$0xff]  ;;  %v86_v34 = vld [vmem:[#allocation6 + $0x48] sm:$0xff]  ;;  %v85_v36 = vld [vmem:[#allocation6 + $0x40] sm:$0xff] }
  0x34   :  { %132 = vmatpush1.msra.mxu0 %v97_v12  ;;  %347 = vmatprep.subr.mxu1 %v232_v25  ;;  %v214_v35 = vld [vmem:[#allocation8 + $0x50] sm:$0xff]  ;;  %v229_v37 = vld [vmem:[#allocation8 + $0xc8] sm:$0xff]  ;;  %v84_v38 = vld [vmem:[#allocation6 + $0x38] sm:$0xff] }
  0x35   :  { %133 = vmatprep.subr.mxu0 %v96_v13  ;;  %348 = vmatpush3.msra.mxu1 %v216_v27  ;;  %v213_v39 = vld [vmem:[#allocation8 + $0x48] sm:$0xff]  ;;  %v83_v40 = vld [vmem:[#allocation6 + $0x30] sm:$0xff]  ;;  %v228_v41 = vld [vmem:[#allocation8 + $0xc0] sm:$0xff] }
  0x36   :  { %134 = vmatpush1.msra.mxu0 %v95_v14  ;;  %349 = vmatprep.subr.mxu1 %v231_v29  ;;  %v82_v42 = vld [vmem:[#allocation6 + $0x28] sm:$0xff]  ;;  %v212_v43 = vld [vmem:[#allocation8 + $0x40] sm:$0xff]  ;;  %v227_v45 = vld [vmem:[#allocation8 + $0xb8] sm:$0xff] }
  0x37   :  { %135 = vmatprep.subr.mxu0 %v94_v17  ;;  %350 = vmatpush3.msra.mxu1 %v215_v31  ;;  %v81_v44 = vld [vmem:[#allocation6 + $0x20] sm:$0xff]  ;;  %v80_v46 = vld [vmem:[#allocation6 + $0x18] sm:$0xff]  ;;  %v79_v48 = vld [vmem:[#allocation6 + $0x10] sm:$0xff] }
  0x38   :  { %136 = vmatpush1.msra.mxu0 %v93_v20  ;;  %351 = vmatprep.subr.mxu1 %v230_v33  ;;  %v211_v47 = vld [vmem:[#allocation8 + $0x38] sm:$0xff]  ;;  %v226_v49 = vld [vmem:[#allocation8 + $0xb0] sm:$0xff]  ;;  %v78_v50 = vld [vmem:[#allocation6 + $0x8] sm:$0xff] }
  0x39   :  { %137 = vmatprep.subr.mxu0 %v92_v22  ;;  %352 = vmatpush3.msra.mxu1 %v214_v35  ;;  %v210_v51 = vld [vmem:[#allocation8 + $0x30] sm:$0xff]  ;;  %v77_v52 = vld [vmem:[#allocation6] sm:$0xff]  ;;  %v225_v53 = vld [vmem:[#allocation8 + $0xa8] sm:$0xff] }
  0x3a   :  { %138 = vmatpush1.msra.mxu0 %v91_v24  ;;  %353 = vmatprep.subr.mxu1 %v229_v37  ;;  %v75_v54 = vld [vmem:[#allocation3] sm:$0xff]  ;;  %v209_v55 = vld [vmem:[#allocation8 + $0x28] sm:$0xff]  ;;  %v224_v56 = vld [vmem:[#allocation8 + $0xa0] sm:$0xff] }
  0x3b   :  { %139 = vmatprep.subr.mxu0 %v90_v26  ;;  %354 = vmatpush3.msra.mxu1 %v213_v39  ;;  %v208_v57 = vld [vmem:[#allocation8 + $0x20] sm:$0xff]  ;;  %v76_v58 = vld [vmem:[#allocation3 + $0x8] sm:$0xff]  ;;  %v222_v61 = vld [vmem:[#allocation8 + $0x90] sm:$0xff] }
  0x3c   :  { %140 = vmatpush1.msra.mxu0 %v89_v28  ;;  %355 = vmatprep.subr.mxu1 %v228_v41  ;;  %v223_v59 = vld [vmem:[#allocation8 + $0x98] sm:$0xff]  ;;  %v206_v62 = vld [vmem:[#allocation8 + $0x10] sm:$0xff]  ;;  %v221_v63 = vld [vmem:[#allocation8 + $0x88] sm:$0xff] }
  0x3d   :  { %141 = vmatprep.subr.mxu0 %v88_v30  ;;  %356 = vmatpush3.msra.mxu1 %v212_v43  ;;  %v207_v60 = vld [vmem:[#allocation8 + $0x18] sm:$0xff]  ;;  %v205_v1 = vld [vmem:[#allocation8 + $0x8] sm:$0xff]  ;;  %v220_v2 = vld [vmem:[#allocation8 + $0x80] sm:$0xff] }
  0x3e   :  { %142 = vmatpush1.msra.mxu0 %v87_v32  ;;  %357 = vmatprep.subr.mxu1 %v227_v45  ;;  %v204_v3 = vld [vmem:[#allocation8] sm:$0xff]  ;;  %v109_v6 = vld [vmem:[%s544_s2] sm:$0x3] }
  0x3f   :  { %143 = vmatprep.subr.mxu0 %v86_v34  ;;  %358 = vmatpush3.msra.mxu1 %v211_v47  ;;  %v340_v23 = vld [vmem:[%s546_s4] ss:$0 sm:$0xff] }
  0x40   :  { %144 = vmatpush1.msra.mxu0 %v85_v36  ;;  %359 = vmatprep.subr.mxu1 %v226_v49 }
  0x41   :  { %145 = vmatprep.subr.mxu0 %v84_v38  ;;  %360 = vmatpush3.msra.mxu1 %v210_v51 }
  0x42   :  { %146 = vmatpush1.msra.mxu0 %v83_v40  ;;  %361 = vmatprep.subr.mxu1 %v225_v53 }
  0x43   :  { %147 = vmatprep.subr.mxu0 %v82_v42  ;;  %362 = vmatpush3.msra.mxu1 %v209_v55 }
  0x44   :  { %148 = vmatpush1.msra.mxu0 %v81_v44  ;;  %363 = vmatprep.subr.mxu1 %v224_v56 }
  0x45   :  { %149 = vmatprep.subr.mxu0 %v80_v46  ;;  %364 = vmatpush3.msra.mxu1 %v208_v57 }
  0x46   :  { %150 = vmatpush1.msra.mxu0 %v79_v48  ;;  %365 = vmatprep.subr.mxu1 %v223_v59 }
  0x47   :  { %151 = vmatprep.subr.mxu0 %v78_v50  ;;  %366 = vmatpush3.msra.mxu1 %v207_v60 }
  0x48   :  { %152 = vmatpush1.msra.mxu0 %v77_v52  ;;  %367 = vmatprep.subr.mxu1 %v222_v61 }
  0x49   :  { %186 = vmatmul.mubr.f32.vlgmr.msra.gmra.mxu0 %v75_v54  ;;  %368 = vmatpush3.msra.mxu1 %v206_v62 }
  0x4a   :  { %191 = vmatprep.mubr.f32.mxu0 %v481_v0  ;;  %369 = vmatprep.subr.mxu1 %v221_v63  ;;  %v111_v0 = vlaneseq }
  0x4b   :  { %370 = vmatpush3.msra.mxu1 %v205_v1 }
  0x4c   :  { %371 = vmatprep.subr.mxu1 %v220_v2  ;;  %v112_v4 = vshrl.u32 %v111_v0, 7 }
  0x4d   :  { %192 = vmatmul.mubr.f32.gmra.mxu0 %v76_v58  ;;  %372 = vmatpush3.msra.mxu1 %v204_v3 }
  0x4e   :  { %v113_v5 = vsub.s32 0, %v112_v4  ;;  %v117_v7 = vsub.s32 1, %v112_v4 }
  0x50   :  { %v114_v8 = vrot.slane %v109_v6, %v113_v5  ;;  %v118_v9 = vrot.slane %v109_v6, %v117_v7 }
 0x109   :  { %v187_v10 = vpop.f32.mrf.mxu0 }
 0x10a   :  { %v188_v11 = vadd.f32 %v187_v10, %v114_v8 }
 0x10b   :  { %v189_v12 = vpop.f32.mrf.mxu0 }
 0x10c   :  { %v190_v13 = vadd.f32 %v189_v12, %v118_v9  ;;  %v198_v16 = vmax.f32 %v188_v11, 0.0 }
 0x10d   :  { %v193_v14 = vpop.f32.mrf.mxu0 }
 0x10e   :  { %v199_v15 = vmax.f32 %v190_v13, 0.0  ;;  %v194_v17 = vadd.f32 %v193_v14, %v114_v8 }
 0x10f   :  { %v195_v18 = vpop.f32.mrf.mxu0 }
 0x110   :  { %v196_v19 = vadd.f32 %v195_v18, %v118_v9  ;;  %300 = vmatprep.mubr.f32.mxu1 %v199_v15  ;;  %v200_v21 = vmax.f32 %v194_v17, 0.0 }
 0x111   :  { %301 = vmatmul.mubr.f32.vlgmr.msra.gmra.mxu1 %v198_v16 }
 0x112   :  { %v201_v20 = vmax.f32 %v196_v19, 0.0 }
 0x114   :  { %305 = vmatprep.mubr.f32.mxu1 %v201_v20 }
 0x115   :  { %306 = vmatmul.mubr.f32.gmra.mxu1 %v200_v21 }
 0x1d1   :  { %v373_v22 = vpop.f32.mrf.mxu1 }
 0x1d3   :  { %v374_v24 = vpop.f32.mrf.mxu1 }
 0x1d4   :  { %v375_v25 = vadd.f32 %v374_v24, %v373_v22 }
 0x1d5   :  { %v376_v26 = vpop.f32.mrf.mxu1 }
 0x1d6   :  { %v311_v27 = vadd.f32 %v375_v25, %v340_v23 }
 0x1d7   :  { %v377_v28 = vpop.f32.mrf.mxu1 }
 0x1d8   :  { %320 = vst [vmem:[#allocation9] sm:$0xff] %v311_v27  ;;  %v378_v29 = vadd.f32 %v377_v28, %v376_v26 }
 0x1da   :  { %v312_v30 = vadd.f32 %v378_v29, %v340_v23 }
 0x1dc   :  { %321 = vst [vmem:[#allocation9 + $0x8] sm:$0xff] %v312_v30 }
 0x1dd   :  { %459 = shalt.err (!%p456_p5)
}
 0x1de   :  { %333 = dma.vmem_to_hbm [thread:$0]  %s328_s13, 256, %s547_s5, [#allocation5], %s478_s28, %s478_s28, %s479_s29  }
 0x1df   :  { %472 = dma.done.wait [#allocation5], 256  }
 0x1e0   :  { %473 = vsyncadd [#allocation5], 4294967040 }
 0x1e1   :  { %337 = vsyncpa [#allocation4], 1 }
 0x1e2   :  { %338 = vsyncpa [#allocation7], 1 }
 0x1e3   :  { %339 = vsyncpa [#allocation5], 1 }

</bundles_post_ra>
